<compile_context>
chip_gen: v6e
topology: v6e:2x2x1
jax: 0.10.0
libtpu: 0.0.40
codegen_flags: <defaults>
</compile_context>

<pallas_src>
import functools

import jax
import jax.numpy as jnp
from jax.experimental import pallas as pl
from jax.experimental.pallas import tpu as pltpu


# ------------------------- fused Pallas kernel -------------------------

def _mapping_kernel(z_ref, w_ref, b_ref, o_ref, *, n_layers, slope,
                    compute_dtype):
    """Whole mapping network for one batch tile.

    z_ref: [TM, D] f32    w_ref: [L, D, D] bf16    b_ref: [L, 1, D] f32
    o_ref: [TM, D] f32
    """
    x = z_ref[...].astype(jnp.float32)

    def linear(i, x):
        # bf16 operands on the MXU, f32 accumulate, f32 bias add (VPU).
        return jnp.dot(x.astype(compute_dtype),
                       w_ref[i].astype(compute_dtype),
                       preferred_element_type=jnp.float32) + b_ref[i]

    # First n_layers - 1 layers carry the LeakyReLU; the last layer does not.
    for i in range(n_layers - 1):
        h = linear(i, x)
        x = jnp.where(h > 0, h, slope * h)          # LeakyReLU(0.01)
    o_ref[...] = linear(n_layers - 1, x)


def mapping_network(z, w_stack, b_stack, *, slope=0.01, block_m=512):
    """z: [B, D] f32; w_stack: [L, D, D] (bf16); b_stack: [L, 1, D] f32."""
    B, D = z.shape
    L, d_in, d_out = w_stack.shape
    assert d_in == D and d_out == D and b_stack.shape == (L, 1, D)

    # Tile the batch dim only when it divides evenly; otherwise use one
    # full-array block (avoids jnp.pad / masked tails entirely).
    tm = block_m if (B % block_m == 0) else B
    grid = (B // tm,)

    kernel = functools.partial(_mapping_kernel, n_layers=L, slope=slope,
                               compute_dtype=w_stack.dtype)
    return pl.pallas_call(
        kernel,
        grid=grid,
        in_specs=[
            pl.BlockSpec((tm, D), lambda i: (i, 0)),        # batch tile
            pl.BlockSpec((L, D, D), lambda i: (0, 0, 0)),   # all weights (VMEM-resident)
            pl.BlockSpec((L, 1, D), lambda i: (0, 0, 0)),   # all biases
        ],
        out_specs=pl.BlockSpec((tm, D), lambda i: (i, 0)),
        out_shape=jax.ShapeDtypeStruct((B, D), jnp.float32),
        compiler_params=pltpu.CompilerParams(
            dimension_semantics=("parallel",)),
    )(z, w_stack, b_stack)


# --------------------------- pure-JAX reference ---------------------------

def mapping_network_ref(z, w_stack, b_stack, slope=0.01):
    L = w_stack.shape[0]
    x = z.astype(jnp.float32)
    for i in range(L):
        h = jnp.dot(x.astype(jnp.bfloat16), w_stack[i].astype(jnp.bfloat16),
                    preferred_element_type=jnp.float32) + b_stack[i, 0]
        x = jnp.where(h > 0, h, slope * h) if i < L - 1 else h
    return x


# --------------------------------- main ---------------------------------

if __name__ == "__main__":
    # Small shapes consistent with the module: latent_dim=128 (stands in for
    # 512, keeps the lane dim a multiple of 128), 8 layers, batch=8.
    B, D, L = 8, 128, 8
    key = jax.random.PRNGKey(0)
    kz, kw, kb = jax.random.split(key, 3)

    z = jax.random.normal(kz, (B, D), jnp.float32)

    # Kaiming-normal (mode=fan_out, nonlinearity=relu): std = sqrt(2 / fan_out).
    std = (2.0 / D) ** 0.5
    w_stack = std * jax.random.normal(kw, (L, D, D), jnp.float32)
    # PyTorch Linear default bias init: U(-1/sqrt(fan_in), 1/sqrt(fan_in)).
    bound = 1.0 / (D ** 0.5)
    b_stack = jax.random.uniform(kb, (L, 1, D), jnp.float32, -bound, bound)

    # Pre-pack the weights once to bf16 for the MXU.
    w_bf16 = w_stack.astype(jnp.bfloat16)

    out = mapping_network(z, w_bf16, b_stack)
    out = jax.block_until_ready(out)

    ref = mapping_network_ref(z, w_stack, b_stack)
    assert out.shape == (B, D), out.shape
    assert bool(jnp.all(jnp.isfinite(out)))
    max_err = float(jnp.max(jnp.abs(out - ref)))
    assert max_err < 2e-2, f"max abs error {max_err}"
    print("KERNEL_OK")
</pallas_src>

<mosaic_0001>
module attributes {stable_mosaic.version = 11 : i64} {
  func.func @_mapping_kernel(%arg0: i32, %arg1: memref<8x128xf32, #tpu.memory_space<vmem>>, %arg2: memref<8x128x128xbf16, #tpu.memory_space<vmem>>, %arg3: memref<8x1x128xf32, #tpu.memory_space<vmem>>, %arg4: memref<8x128xf32, #tpu.memory_space<vmem>>) attributes {dimension_semantics = [#tpu.dimension_semantics<parallel>], iteration_bounds = array<i64: 1>, scalar_prefetch = 0 : i64, scratch_operands = 0 : i64, tpu.core_type = #tpu.core_type<tc>, window_params = [{transform_indices = @transform_0, window_bounds = array<i64: 8, 128>}, {pipeline_mode = #tpu.pipeline_mode<synchronous>, transform_indices = @transform_1, window_bounds = array<i64: 8, 128, 128>}, {pipeline_mode = #tpu.pipeline_mode<synchronous>, transform_indices = @transform_2, window_bounds = array<i64: 8, 1, 128>}, {transform_indices = @transform_3, window_bounds = array<i64: 8, 128>}]} {
    %c0 = arith.constant 0 : index
    %c0_0 = arith.constant 0 : index
    %0 = vector.load %arg1[%c0, %c0_0] : memref<8x128xf32, #tpu.memory_space<vmem>>, vector<8x128xf32>
    %1 = arith.truncf %0 : vector<8x128xf32> to vector<8x128xbf16>
    %c0_1 = arith.constant 0 : index
    %c0_2 = arith.constant 0 : index
    %c0_3 = arith.constant 0 : index
    %2 = vector.load %arg2[%c0_1, %c0_2, %c0_3] : memref<8x128x128xbf16, #tpu.memory_space<vmem>>, vector<1x128x128xbf16>
    %3 = vector.shape_cast %2 : vector<1x128x128xbf16> to vector<128x128xbf16>
    %cst = arith.constant dense<0.000000e+00> : vector<8x128xf32>
    %4 = tpu.matmul %1, %3, %cst {dimension_numbers = #tpu.dot_dimension_numbers<[1], [0], [0], [1], [0, 0, 1, 1], [], []>} : vector<8x128xbf16>, vector<128x128xbf16>, vector<8x128xf32> -> vector<8x128xf32>
    %c0_4 = arith.constant 0 : index
    %c0_5 = arith.constant 0 : index
    %c0_6 = arith.constant 0 : index
    %5 = vector.load %arg3[%c0_4, %c0_5, %c0_6] : memref<8x1x128xf32, #tpu.memory_space<vmem>>, vector<1x1x128xf32>
    %6 = vector.shape_cast %5 : vector<1x1x128xf32> to vector<1x128xf32>
    %7 = vector.broadcast %6 : vector<1x128xf32> to vector<8x128xf32>
    %8 = arith.addf %4, %7 : vector<8x128xf32>
    %cst_7 = arith.constant 0.000000e+00 : f32
    %9 = vector.broadcast %cst_7 : f32 to vector<8x128xf32>
    %10 = arith.cmpf ogt, %8, %9 : vector<8x128xf32>
    %cst_8 = arith.constant 0.00999999977 : f32
    %11 = vector.broadcast %cst_8 : f32 to vector<8x128xf32>
    %12 = arith.mulf %11, %8 : vector<8x128xf32>
    %13 = arith.select %10, %8, %12 : vector<8x128xi1>, vector<8x128xf32>
    %14 = arith.truncf %13 : vector<8x128xf32> to vector<8x128xbf16>
    %c1 = arith.constant 1 : index
    %c0_9 = arith.constant 0 : index
    %c0_10 = arith.constant 0 : index
    %15 = vector.load %arg2[%c1, %c0_9, %c0_10] : memref<8x128x128xbf16, #tpu.memory_space<vmem>>, vector<1x128x128xbf16>
    %16 = vector.shape_cast %15 : vector<1x128x128xbf16> to vector<128x128xbf16>
    %cst_11 = arith.constant dense<0.000000e+00> : vector<8x128xf32>
    %17 = tpu.matmul %14, %16, %cst_11 {dimension_numbers = #tpu.dot_dimension_numbers<[1], [0], [0], [1], [0, 0, 1, 1], [], []>} : vector<8x128xbf16>, vector<128x128xbf16>, vector<8x128xf32> -> vector<8x128xf32>
    %c1_12 = arith.constant 1 : index
    %c0_13 = arith.constant 0 : index
    %c0_14 = arith.constant 0 : index
    %18 = vector.load %arg3[%c1_12, %c0_13, %c0_14] : memref<8x1x128xf32, #tpu.memory_space<vmem>>, vector<1x1x128xf32>
    %19 = vector.shape_cast %18 : vector<1x1x128xf32> to vector<1x128xf32>
    %20 = vector.broadcast %19 : vector<1x128xf32> to vector<8x128xf32>
    %21 = arith.addf %17, %20 : vector<8x128xf32>
    %cst_15 = arith.constant 0.000000e+00 : f32
    %22 = vector.broadcast %cst_15 : f32 to vector<8x128xf32>
    %23 = arith.cmpf ogt, %21, %22 : vector<8x128xf32>
    %cst_16 = arith.constant 0.00999999977 : f32
    %24 = vector.broadcast %cst_16 : f32 to vector<8x128xf32>
    %25 = arith.mulf %24, %21 : vector<8x128xf32>
    %26 = arith.select %23, %21, %25 : vector<8x128xi1>, vector<8x128xf32>
    %27 = arith.truncf %26 : vector<8x128xf32> to vector<8x128xbf16>
    %c2 = arith.constant 2 : index
    %c0_17 = arith.constant 0 : index
    %c0_18 = arith.constant 0 : index
    %28 = vector.load %arg2[%c2, %c0_17, %c0_18] : memref<8x128x128xbf16, #tpu.memory_space<vmem>>, vector<1x128x128xbf16>
    %29 = vector.shape_cast %28 : vector<1x128x128xbf16> to vector<128x128xbf16>
    %cst_19 = arith.constant dense<0.000000e+00> : vector<8x128xf32>
    %30 = tpu.matmul %27, %29, %cst_19 {dimension_numbers = #tpu.dot_dimension_numbers<[1], [0], [0], [1], [0, 0, 1, 1], [], []>} : vector<8x128xbf16>, vector<128x128xbf16>, vector<8x128xf32> -> vector<8x128xf32>
    %c2_20 = arith.constant 2 : index
    %c0_21 = arith.constant 0 : index
    %c0_22 = arith.constant 0 : index
    %31 = vector.load %arg3[%c2_20, %c0_21, %c0_22] : memref<8x1x128xf32, #tpu.memory_space<vmem>>, vector<1x1x128xf32>
    %32 = vector.shape_cast %31 : vector<1x1x128xf32> to vector<1x128xf32>
    %33 = vector.broadcast %32 : vector<1x128xf32> to vector<8x128xf32>
    %34 = arith.addf %30, %33 : vector<8x128xf32>
    %cst_23 = arith.constant 0.000000e+00 : f32
    %35 = vector.broadcast %cst_23 : f32 to vector<8x128xf32>
    %36 = arith.cmpf ogt, %34, %35 : vector<8x128xf32>
    %cst_24 = arith.constant 0.00999999977 : f32
    %37 = vector.broadcast %cst_24 : f32 to vector<8x128xf32>
    %38 = arith.mulf %37, %34 : vector<8x128xf32>
    %39 = arith.select %36, %34, %38 : vector<8x128xi1>, vector<8x128xf32>
    %40 = arith.truncf %39 : vector<8x128xf32> to vector<8x128xbf16>
    %c3 = arith.constant 3 : index
    %c0_25 = arith.constant 0 : index
    %c0_26 = arith.constant 0 : index
    %41 = vector.load %arg2[%c3, %c0_25, %c0_26] : memref<8x128x128xbf16, #tpu.memory_space<vmem>>, vector<1x128x128xbf16>
    %42 = vector.shape_cast %41 : vector<1x128x128xbf16> to vector<128x128xbf16>
    %cst_27 = arith.constant dense<0.000000e+00> : vector<8x128xf32>
    %43 = tpu.matmul %40, %42, %cst_27 {dimension_numbers = #tpu.dot_dimension_numbers<[1], [0], [0], [1], [0, 0, 1, 1], [], []>} : vector<8x128xbf16>, vector<128x128xbf16>, vector<8x128xf32> -> vector<8x128xf32>
    %c3_28 = arith.constant 3 : index
    %c0_29 = arith.constant 0 : index
    %c0_30 = arith.constant 0 : index
    %44 = vector.load %arg3[%c3_28, %c0_29, %c0_30] : memref<8x1x128xf32, #tpu.memory_space<vmem>>, vector<1x1x128xf32>
    %45 = vector.shape_cast %44 : vector<1x1x128xf32> to vector<1x128xf32>
    %46 = vector.broadcast %45 : vector<1x128xf32> to vector<8x128xf32>
    %47 = arith.addf %43, %46 : vector<8x128xf32>
    %cst_31 = arith.constant 0.000000e+00 : f32
    %48 = vector.broadcast %cst_31 : f32 to vector<8x128xf32>
    %49 = arith.cmpf ogt, %47, %48 : vector<8x128xf32>
    %cst_32 = arith.constant 0.00999999977 : f32
    %50 = vector.broadcast %cst_32 : f32 to vector<8x128xf32>
    %51 = arith.mulf %50, %47 : vector<8x128xf32>
    %52 = arith.select %49, %47, %51 : vector<8x128xi1>, vector<8x128xf32>
    %53 = arith.truncf %52 : vector<8x128xf32> to vector<8x128xbf16>
    %c4 = arith.constant 4 : index
    %c0_33 = arith.constant 0 : index
    %c0_34 = arith.constant 0 : index
    %54 = vector.load %arg2[%c4, %c0_33, %c0_34] : memref<8x128x128xbf16, #tpu.memory_space<vmem>>, vector<1x128x128xbf16>
    %55 = vector.shape_cast %54 : vector<1x128x128xbf16> to vector<128x128xbf16>
    %cst_35 = arith.constant dense<0.000000e+00> : vector<8x128xf32>
    %56 = tpu.matmul %53, %55, %cst_35 {dimension_numbers = #tpu.dot_dimension_numbers<[1], [0], [0], [1], [0, 0, 1, 1], [], []>} : vector<8x128xbf16>, vector<128x128xbf16>, vector<8x128xf32> -> vector<8x128xf32>
    %c4_36 = arith.constant 4 : index
    %c0_37 = arith.constant 0 : index
    %c0_38 = arith.constant 0 : index
    %57 = vector.load %arg3[%c4_36, %c0_37, %c0_38] : memref<8x1x128xf32, #tpu.memory_space<vmem>>, vector<1x1x128xf32>
    %58 = vector.shape_cast %57 : vector<1x1x128xf32> to vector<1x128xf32>
    %59 = vector.broadcast %58 : vector<1x128xf32> to vector<8x128xf32>
    %60 = arith.addf %56, %59 : vector<8x128xf32>
    %cst_39 = arith.constant 0.000000e+00 : f32
    %61 = vector.broadcast %cst_39 : f32 to vector<8x128xf32>
    %62 = arith.cmpf ogt, %60, %61 : vector<8x128xf32>
    %cst_40 = arith.constant 0.00999999977 : f32
    %63 = vector.broadcast %cst_40 : f32 to vector<8x128xf32>
    %64 = arith.mulf %63, %60 : vector<8x128xf32>
    %65 = arith.select %62, %60, %64 : vector<8x128xi1>, vector<8x128xf32>
    %66 = arith.truncf %65 : vector<8x128xf32> to vector<8x128xbf16>
    %c5 = arith.constant 5 : index
    %c0_41 = arith.constant 0 : index
    %c0_42 = arith.constant 0 : index
    %67 = vector.load %arg2[%c5, %c0_41, %c0_42] : memref<8x128x128xbf16, #tpu.memory_space<vmem>>, vector<1x128x128xbf16>
    %68 = vector.shape_cast %67 : vector<1x128x128xbf16> to vector<128x128xbf16>
    %cst_43 = arith.constant dense<0.000000e+00> : vector<8x128xf32>
    %69 = tpu.matmul %66, %68, %cst_43 {dimension_numbers = #tpu.dot_dimension_numbers<[1], [0], [0], [1], [0, 0, 1, 1], [], []>} : vector<8x128xbf16>, vector<128x128xbf16>, vector<8x128xf32> -> vector<8x128xf32>
    %c5_44 = arith.constant 5 : index
    %c0_45 = arith.constant 0 : index
    %c0_46 = arith.constant 0 : index
    %70 = vector.load %arg3[%c5_44, %c0_45, %c0_46] : memref<8x1x128xf32, #tpu.memory_space<vmem>>, vector<1x1x128xf32>
    %71 = vector.shape_cast %70 : vector<1x1x128xf32> to vector<1x128xf32>
    %72 = vector.broadcast %71 : vector<1x128xf32> to vector<8x128xf32>
    %73 = arith.addf %69, %72 : vector<8x128xf32>
    %cst_47 = arith.constant 0.000000e+00 : f32
    %74 = vector.broadcast %cst_47 : f32 to vector<8x128xf32>
    %75 = arith.cmpf ogt, %73, %74 : vector<8x128xf32>
    %cst_48 = arith.constant 0.00999999977 : f32
    %76 = vector.broadcast %cst_48 : f32 to vector<8x128xf32>
    %77 = arith.mulf %76, %73 : vector<8x128xf32>
    %78 = arith.select %75, %73, %77 : vector<8x128xi1>, vector<8x128xf32>
    %79 = arith.truncf %78 : vector<8x128xf32> to vector<8x128xbf16>
    %c6 = arith.constant 6 : index
    %c0_49 = arith.constant 0 : index
    %c0_50 = arith.constant 0 : index
    %80 = vector.load %arg2[%c6, %c0_49, %c0_50] : memref<8x128x128xbf16, #tpu.memory_space<vmem>>, vector<1x128x128xbf16>
    %81 = vector.shape_cast %80 : vector<1x128x128xbf16> to vector<128x128xbf16>
    %cst_51 = arith.constant dense<0.000000e+00> : vector<8x128xf32>
    %82 = tpu.matmul %79, %81, %cst_51 {dimension_numbers = #tpu.dot_dimension_numbers<[1], [0], [0], [1], [0, 0, 1, 1], [], []>} : vector<8x128xbf16>, vector<128x128xbf16>, vector<8x128xf32> -> vector<8x128xf32>
    %c6_52 = arith.constant 6 : index
    %c0_53 = arith.constant 0 : index
    %c0_54 = arith.constant 0 : index
    %83 = vector.load %arg3[%c6_52, %c0_53, %c0_54] : memref<8x1x128xf32, #tpu.memory_space<vmem>>, vector<1x1x128xf32>
    %84 = vector.shape_cast %83 : vector<1x1x128xf32> to vector<1x128xf32>
    %85 = vector.broadcast %84 : vector<1x128xf32> to vector<8x128xf32>
    %86 = arith.addf %82, %85 : vector<8x128xf32>
    %cst_55 = arith.constant 0.000000e+00 : f32
    %87 = vector.broadcast %cst_55 : f32 to vector<8x128xf32>
    %88 = arith.cmpf ogt, %86, %87 : vector<8x128xf32>
    %cst_56 = arith.constant 0.00999999977 : f32
    %89 = vector.broadcast %cst_56 : f32 to vector<8x128xf32>
    %90 = arith.mulf %89, %86 : vector<8x128xf32>
    %91 = arith.select %88, %86, %90 : vector<8x128xi1>, vector<8x128xf32>
    %92 = arith.truncf %91 : vector<8x128xf32> to vector<8x128xbf16>
    %c7 = arith.constant 7 : index
    %c0_57 = arith.constant 0 : index
    %c0_58 = arith.constant 0 : index
    %93 = vector.load %arg2[%c7, %c0_57, %c0_58] : memref<8x128x128xbf16, #tpu.memory_space<vmem>>, vector<1x128x128xbf16>
    %94 = vector.shape_cast %93 : vector<1x128x128xbf16> to vector<128x128xbf16>
    %cst_59 = arith.constant dense<0.000000e+00> : vector<8x128xf32>
    %95 = tpu.matmul %92, %94, %cst_59 {dimension_numbers = #tpu.dot_dimension_numbers<[1], [0], [0], [1], [0, 0, 1, 1], [], []>} : vector<8x128xbf16>, vector<128x128xbf16>, vector<8x128xf32> -> vector<8x128xf32>
    %c7_60 = arith.constant 7 : index
    %c0_61 = arith.constant 0 : index
    %c0_62 = arith.constant 0 : index
    %96 = vector.load %arg3[%c7_60, %c0_61, %c0_62] : memref<8x1x128xf32, #tpu.memory_space<vmem>>, vector<1x1x128xf32>
    %97 = vector.shape_cast %96 : vector<1x1x128xf32> to vector<1x128xf32>
    %98 = vector.broadcast %97 : vector<1x128xf32> to vector<8x128xf32>
    %99 = arith.addf %95, %98 : vector<8x128xf32>
    %c0_63 = arith.constant 0 : index
    %c0_64 = arith.constant 0 : index
    %100 = vector.load %arg4[%c0_63, %c0_64] : memref<8x128xf32, #tpu.memory_space<vmem>>, vector<8x128xf32>
    tpu.vector_store %arg4[%c0_63, %c0_64], %99 {strides = array<i32>} : memref<8x128xf32, #tpu.memory_space<vmem>>, vector<8x128xf32>,
    return
  }
  func.func @transform_0(%arg0: i32) -> (i32, i32) {
    %c0_i32 = arith.constant 0 : i32
    %c0_i32_0 = arith.constant 0 : i32
    return %arg0, %c0_i32 : i32, i32
  }
  func.func @transform_1(%arg0: i32) -> (i32, i32, i32) {
    %c0_i32 = arith.constant 0 : i32
    %c0_i32_0 = arith.constant 0 : i32
    %c0_i32_1 = arith.constant 0 : i32
    %c0_i32_2 = arith.constant 0 : i32
    return %c0_i32, %c0_i32_0, %c0_i32_1 : i32, i32, i32
  }
  func.func @transform_2(%arg0: i32) -> (i32, i32, i32) {
    %c0_i32 = arith.constant 0 : i32
    %c0_i32_0 = arith.constant 0 : i32
    %c0_i32_1 = arith.constant 0 : i32
    %c0_i32_2 = arith.constant 0 : i32
    return %c0_i32, %c0_i32_0, %c0_i32_1 : i32, i32, i32
  }
  func.func @transform_3(%arg0: i32) -> (i32, i32) {
    %c0_i32 = arith.constant 0 : i32
    %c0_i32_0 = arith.constant 0 : i32
    return %arg0, %c0_i32 : i32, i32
  }
}

</mosaic_0001>

<bundles_post_ra>
// kernel: tpu_custom_call.1
= control target key start
LH: loop header
LB: loop body
LE: loop exit
PB: predicated region body
PF: predicated region fallthrough
CT: control target
= control target key end

     0   :  { %8 = vsyncpa [#allocation3], 0  ;;  %s1590_s0 = inlined_call_operand.hbm [shape: f32[8,128], index: 0, kind: input, shape index: {}]   ;;  %s1591_s1 = inlined_call_operand.hbm [shape: bf16[8,128,128], index: 1, kind: input, shape index: {}]   ;;  %s1592_s2 = inlined_call_operand.hbm [shape: f32[8,1,128], index: 2, kind: input, shape index: {}]   ;;  %s1593_s3 = inlined_call_operand.hbm [shape: f32[8,128], index: 3, kind: output, shape index: {}]  }
   0x1   :  { %9 = vsyncpa [#allocation6], 0 }
   0x2   :  { %10 = vsyncpa [#allocation4], 0  ;;  %s1468_s12 = smov [#allocation5]  }
   0x3   :  { %s26_s13 = sshll.u32 %s1468_s12, 4  ;;  %s27_s13 = int_to_ptr.vmem [resolvable:$true] %s26_s13 }
   0x4   :  { %s1390_s14 = scalar_lea.vmem %s27_s13, 8192  ;;  %p1395_p1 = scmp.lt.s32.totalorder %s27_s13, %s27_s13 }
   0x5   :  { %p1391_p0 = scmp.ne.s32.totalorder %s27_s13, %s1390_s14  ;;  %p1396_p2 = scmp.lt.s32.totalorder %s1390_s14, %s1390_s14 }
   0x7   :  { %p1397_p3 = por %p1396_p2, %p1395_p1 }
   0x9   :  { %p1398_p4 = pnand %p1397_p3, %p1391_p0 }
   0xb   :  { %1401 = shalt.err (!%p1398_p4)
}
   0xc   :  { %s1469_s15 = smov 64   ;;  %s1470_s16 = smov 4  }
   0xd   :  { %32 = dma.hbm_to_vmem [thread:$0]  %s1591_s1, 8192, %s27_s13, [#allocation6], %s1469_s15, %s1469_s15, %s1470_s16  }
   0xe   :  { %s1471_s19 = smov [#allocation2]   ;;  %s1472_s21 = smov [#allocation7]  }
   0xf   :  { %s17_s20 = sshll.u32 %s1471_s19, 4  ;;  %s38_s22 = sshll.u32 %s1472_s21, 4  ;;  %s18_s20 = int_to_ptr.vmem [resolvable:$true] %s17_s20  ;;  %s39_s22 = int_to_ptr.vmem [resolvable:$true] %s38_s22 }
  0x10   :  { %s1410_s23 = scalar_lea.vmem %s18_s20, 128  ;;  %p1415_p6 = scmp.lt.s32.totalorder %s18_s20, %s18_s20 }
  0x11   :  { %p1411_p5 = scmp.ne.s32.totalorder %s18_s20, %s1410_s23  ;;  %p1416_p7 = scmp.lt.s32.totalorder %s1410_s23, %s1410_s23 }
  0x13   :  { %p1417_p8 = por %p1416_p7, %p1415_p6 }
  0x15   :  { %p1418_p9 = pnand %p1417_p8, %p1411_p5 }
  0x17   :  { %1421 = shalt.err (!%p1418_p9)
}
  0x18   :  { %20 = dma.hbm_to_vmem [thread:$0]  %s1590_s0, 128, %s18_s20, [#allocation3]  }
  0x19   :  { %s1430_s26 = scalar_lea.vmem %s39_s22, 128  ;;  %p1435_p11 = scmp.lt.s32.totalorder %s39_s22, %s39_s22 }
  0x1a   :  { %p1431_p10 = scmp.ne.s32.totalorder %s39_s22, %s1430_s26  ;;  %p1436_p12 = scmp.lt.s32.totalorder %s1430_s26, %s1430_s26 }
  0x1c   :  { %p1437_p13 = por %p1436_p12, %p1435_p11 }
  0x1e   :  { %p1438_p0 = pnand %p1437_p13, %p1431_p10 }
  0x20   :  { %1441 = shalt.err (!%p1438_p0)
}
  0x21   :  { %s1473_s1 = smov 16   ;;  %s1474_s27 = smov 1  }
  0x22   :  { %44 = dma.hbm_to_vmem [thread:$0]  %s1592_s2, 128, %s39_s22, [#allocation6], %s1473_s1, %s1473_s1, %s1474_s27  }
  0x23   :  { %1462 = dma.done.wait [#allocation3], 128  }
  0x24   :  { %1463 = vsyncadd [#allocation3], 4294967168 }
  0x25   :  { %1464 = dma.done.wait [#allocation6], 8320  }
  0x26   :  { %1465 = vsyncadd [#allocation6], 4294958976  ;;  %v1475_v0 = vmov 0.0   ;;  %vm1476_vm0 = vmmov 0   ;;  %v1318_v1 = vld [vmem:[#allocation5 + $0x38] sm:$0xff]   ;;  %v1319_v2 = vld [vmem:[#allocation5 + $0x30] sm:$0xff]  }
  0x27   :  { %1148 = vmatprep.subr.bf16.mxu0 %v1475_v0  ;;  %1164 = vmatprep.mubr.msk.bf16.mxu0 %vm1476_vm0, %v1475_v0  ;;  %v1320_v3 = vld [vmem:[#allocation5 + $0x28] sm:$0xff]   ;;  %v1326_v4 = vld [vmem:[#allocation5 + $0x78] sm:$0xff]   ;;  %v1321_v5 = vld [vmem:[#allocation5 + $0x20] sm:$0xff]   ;;  %s1477_s0 = smov [#allocation8]  }
  0x28   :  { %1168 = vmatprep.subr.bf16.mxu1 %v1475_v0  ;;  %1184 = vmatprep.mubr.msk.bf16.mxu1 %vm1476_vm0, %v1475_v0  ;;  %v1327_v6 = vld [vmem:[#allocation5 + $0x70] sm:$0xff]   ;;  %v1322_v7 = vld [vmem:[#allocation5 + $0x18] sm:$0xff]   ;;  %v1328_v8 = vld [vmem:[#allocation5 + $0x68] sm:$0xff]   ;;  %s994_s2 = sshll.u32 %s1477_s0, 4  ;;  %s995_s2 = int_to_ptr.vmem [resolvable:$true] %s994_s2 }
  0x29   :  { %1149 = vmatpush3.bf16.msra.mxu0 %v1318_v1  ;;  %1169 = vmatpush3.bf16.msra.mxu1 %v1326_v4  ;;  %v1323_v9 = vld [vmem:[#allocation5 + $0x10] sm:$0xff]   ;;  %v1329_v10 = vld [vmem:[#allocation5 + $0x60] sm:$0xff]   ;;  %v1324_v11 = vld [vmem:[#allocation5 + $0x8] sm:$0xff]   ;;  %s1442_s30 = scalar_lea.vmem %s995_s2, 128  ;;  %p1447_p2 = scmp.lt.s32.totalorder %s995_s2, %s995_s2 }
  0x2a   :  { %1150 = vmatprep.subr.bf16.mxu0 %v1475_v0  ;;  %1170 = vmatprep.subr.bf16.mxu1 %v1475_v0  ;;  %v1330_v12 = vld [vmem:[#allocation5 + $0x58] sm:$0xff]   ;;  %v1325_v13 = vld [vmem:[#allocation5] sm:$0xff]   ;;  %v1331_v15 = vld [vmem:[#allocation5 + $0x50] sm:$0xff]   ;;  %p1443_p1 = scmp.ne.s32.totalorder %s995_s2, %s1442_s30  ;;  %p1448_p3 = scmp.lt.s32.totalorder %s1442_s30, %s1442_s30 }
  0x2b   :  { %v55_v14 = vld [vmem:[#allocation2] sm:$0xff]  ;;  %v1332_v17 = vld [vmem:[#allocation5 + $0x48] sm:$0xff]   ;;  %v1333_v18 = vld [vmem:[#allocation5 + $0x40] sm:$0xff]  }
  0x2c   :  { %v56_v16 = vpack.c.bf16 %v55_v14, %v55_v14  ;;  %v1334_v19 = vld [vmem:[#allocation5 + $0xb8] sm:$0xff]   ;;  %v1335_v20 = vld [vmem:[#allocation5 + $0xb0] sm:$0xff]   ;;  %v1336_v21 = vld [vmem:[#allocation5 + $0xa8] sm:$0xff]   ;;  %p1449_p4 = por %p1448_p3, %p1447_p2 }
  0x2d   :  { %1151 = vmatpush3.bf16.msra.mxu0 %v1319_v2  ;;  %1171 = vmatpush3.bf16.msra.mxu1 %v1327_v6  ;;  %v1337_v22 = vld [vmem:[#allocation5 + $0xa0] sm:$0xff]   ;;  %v1338_v23 = vld [vmem:[#allocation5 + $0x98] sm:$0xff]   ;;  %v1339_v24 = vld [vmem:[#allocation5 + $0x90] sm:$0xff]  }
  0x2e   :  { %1152 = vmatprep.subr.bf16.mxu0 %v1475_v0  ;;  %1172 = vmatprep.subr.bf16.mxu1 %v1475_v0  ;;  %v1004_v25 = vld [vmem:[#allocation7] ss:$0 sm:$0xff]  ;;  %v1340_v34 = vld [vmem:[#allocation5 + $0x88] sm:$0xff]   ;;  %v1342_v36 = vld [vmem:[#allocation5 + $0xf8] sm:$0xff]   ;;  %p1450_p5 = pnand %p1449_p4, %p1443_p1 }
  0x2f   :  { %v1341_v35 = vld [vmem:[#allocation5 + $0x80] sm:$0xff]   ;;  %v1343_v37 = vld [vmem:[#allocation5 + $0xf0] sm:$0xff]   ;;  %v1344_v38 = vld [vmem:[#allocation5 + $0xe8] sm:$0xff]  }
  0x30   :  { %v1345_v39 = vld [vmem:[#allocation5 + $0xe0] sm:$0xff]   ;;  %v1346_v40 = vld [vmem:[#allocation5 + $0xd8] sm:$0xff]   ;;  %v1347_v41 = vld [vmem:[#allocation5 + $0xd0] sm:$0xff]  }
  0x31   :  { %1153 = vmatpush3.bf16.msra.mxu0 %v1320_v3  ;;  %1173 = vmatpush3.bf16.msra.mxu1 %v1328_v8  ;;  %v1013_v42 = vld [vmem:[#allocation7 + $0x1] ss:$0 sm:$0xff]  ;;  %v1348_v51 = vld [vmem:[#allocation5 + $0xc8] sm:$0xff]   ;;  %v1350_v53 = vld [vmem:[#allocation5 + $0x138] sm:$0xff]  }
  0x32   :  { %1154 = vmatprep.subr.bf16.mxu0 %v1475_v0  ;;  %1174 = vmatprep.subr.bf16.mxu1 %v1475_v0  ;;  %v1349_v52 = vld [vmem:[#allocation5 + $0xc0] sm:$0xff]   ;;  %v1351_v54 = vld [vmem:[#allocation5 + $0x130] sm:$0xff]   ;;  %v1352_v55 = vld [vmem:[#allocation5 + $0x128] sm:$0xff]  }
  0x33   :  { %v1353_v56 = vld [vmem:[#allocation5 + $0x120] sm:$0xff]   ;;  %v1354_v57 = vld [vmem:[#allocation5 + $0x118] sm:$0xff]   ;;  %v1355_v58 = vld [vmem:[#allocation5 + $0x110] sm:$0xff]  }
  0x34   :  { %v1022_v59 = vld [vmem:[#allocation7 + $0x2] ss:$0 sm:$0xff]  ;;  %v1359_v8 = vld [vmem:[#allocation5 + $0x170] sm:$0xff]  }
  0x35   :  { %1155 = vmatpush3.bf16.msra.mxu0 %v1321_v5  ;;  %1175 = vmatpush3.bf16.msra.mxu1 %v1329_v10  ;;  %v1356_v5 = vld [vmem:[#allocation5 + $0x108] sm:$0xff]   ;;  %v1357_v6 = vld [vmem:[#allocation5 + $0x100] sm:$0xff]  }
  0x36   :  { %1156 = vmatprep.subr.bf16.mxu0 %v1475_v0  ;;  %1176 = vmatprep.subr.bf16.mxu1 %v1475_v0  ;;  %v1361_v10 = vld [vmem:[#allocation5 + $0x160] sm:$0xff]  }
  0x39   :  { %1157 = vmatpush3.bf16.msra.mxu0 %v1322_v7  ;;  %1177 = vmatpush3.bf16.msra.mxu1 %v1330_v12  ;;  %v1358_v7 = vld [vmem:[#allocation5 + $0x178] sm:$0xff]   ;;  %v1363_v12 = vld [vmem:[#allocation5 + $0x150] sm:$0xff]  }
  0x3a   :  { %1158 = vmatprep.subr.bf16.mxu0 %v1475_v0  ;;  %1178 = vmatprep.subr.bf16.mxu1 %v1475_v0 }
  0x3d   :  { %1159 = vmatpush3.bf16.msra.mxu0 %v1323_v9  ;;  %1179 = vmatpush3.bf16.msra.mxu1 %v1331_v15  ;;  %v1360_v9 = vld [vmem:[#allocation5 + $0x168] sm:$0xff]  }
  0x3e   :  { %1160 = vmatprep.subr.bf16.mxu0 %v1475_v0  ;;  %1180 = vmatprep.subr.bf16.mxu1 %v1475_v0 }
  0x41   :  { %1161 = vmatpush3.bf16.msra.mxu0 %v1324_v11  ;;  %1181 = vmatpush3.bf16.msra.mxu1 %v1332_v17  ;;  %v1362_v11 = vld [vmem:[#allocation5 + $0x158] sm:$0xff]  }
  0x42   :  { %1162 = vmatprep.subr.bf16.mxu0 %v1475_v0  ;;  %1182 = vmatprep.subr.bf16.mxu1 %v1475_v0 }
  0x45   :  { %1163 = vmatpush3.bf16.msra.mxu0 %v1325_v13  ;;  %1183 = vmatpush3.bf16.msra.mxu1 %v1333_v18  ;;  %v1031_v13 = vld [vmem:[#allocation7 + $0x3] ss:$0 sm:$0xff] }
  0x46   :  { %1188 = vmatprep.subr.bf16.mxu0 %v1475_v0  ;;  %1208 = vmatprep.subr.bf16.mxu1 %v1475_v0 }
  0x48   :  { %1165 = vmatmul.mubr.bf16.vlgmr.msra.gmra.mxu0 %v56_v16 }
  0x49   :  { %1204 = vmatprep.mubr.msk.bf16.mxu0 %vm1476_vm0, %v1475_v0  ;;  %1189 = vmatpush3.bf16.msra.mxu0 %v1334_v19 }
  0x4a   :  { %1190 = vmatprep.subr.bf16.mxu0 %v1475_v0 }
  0x4d   :  { %1191 = vmatpush3.bf16.msra.mxu0 %v1335_v20 }
  0x4e   :  { %1192 = vmatprep.subr.bf16.mxu0 %v1475_v0 }
  0x51   :  { %1193 = vmatpush3.bf16.msra.mxu0 %v1336_v21 }
  0x52   :  { %1194 = vmatprep.subr.bf16.mxu0 %v1475_v0 }
  0x55   :  { %1195 = vmatpush3.bf16.msra.mxu0 %v1337_v22  ;;  %v1364_v22 = vld [vmem:[#allocation5 + $0x148] sm:$0xff]  }
  0x56   :  { %1196 = vmatprep.subr.bf16.mxu0 %v1475_v0 }
  0x59   :  { %1197 = vmatpush3.bf16.msra.mxu0 %v1338_v23  ;;  %v1365_v23 = vld [vmem:[#allocation5 + $0x140] sm:$0xff]  }
  0x5a   :  { %1198 = vmatprep.subr.bf16.mxu0 %v1475_v0 }
  0x5d   :  { %1199 = vmatpush3.bf16.msra.mxu0 %v1339_v24  ;;  %v1366_v24 = vld [vmem:[#allocation5 + $0x1b8] sm:$0xff]  }
  0x5e   :  { %1200 = vmatprep.subr.bf16.mxu0 %v1475_v0 }
  0x61   :  { %1201 = vmatpush3.bf16.msra.mxu0 %v1340_v34 }
  0x62   :  { %1202 = vmatprep.subr.bf16.mxu0 %v1475_v0 }
  0x65   :  { %1203 = vmatpush3.bf16.msra.mxu0 %v1341_v35 }
  0x66   :  { %1228 = vmatprep.subr.bf16.mxu0 %v1475_v0 }
 0x108   :  { %v162_v26 = vpop.f32.mrf.mxu0 }
 0x109   :  { %v163_v27 = vadd.f32 %v1004_v25, %v162_v26  ;;  %v1367_v25 = vld [vmem:[#allocation5 + $0x1b0] sm:$0xff]   ;;  %v1368_v26 = vld [vmem:[#allocation5 + $0x1a8] sm:$0xff]  }
 0x10a   :  { %v1166_v28 = vpop.f32.mrf.mxu0 }
 0x10b   :  { %vm168_vm1 = vcmp.gt.f32.partialorder %v163_v27, 0.0  ;;  %v169_v29 = vmul.f32 0.01, %v163_v27  ;;  %v1370_v28 = vld [vmem:[#allocation5 + $0x198] sm:$0xff]  }
 0x10c   :  { %v165_v30 = vpop.f32.mrf.mxu0 }
 0x10d   :  { %v170_v31 = vsel %vm168_vm1, %v163_v27, %v169_v29  ;;  %v1369_v27 = vld [vmem:[#allocation5 + $0x1a0] sm:$0xff]   ;;  %v1371_v29 = vld [vmem:[#allocation5 + $0x190] sm:$0xff]  }
 0x10e   :  { %v1167_v32 = vpop.f32.mrf.mxu0  ;;  %v171_v33 = vpack.c.bf16 %v170_v31, %v170_v31  ;;  %v1040_v30 = vld [vmem:[#allocation7 + $0x4] ss:$0 sm:$0xff] }
 0x110   :  { %1185 = vmatmul.mubr.bf16.vlgmr.msra.gmra.mxu1 %v171_v33 }
 0x111   :  { %1224 = vmatprep.mubr.msk.bf16.mxu1 %vm1476_vm0, %v1475_v0  ;;  %1209 = vmatpush3.bf16.msra.mxu1 %v1342_v36 }
 0x112   :  { %1210 = vmatprep.subr.bf16.mxu1 %v1475_v0 }
 0x115   :  { %1211 = vmatpush3.bf16.msra.mxu1 %v1343_v37 }
 0x116   :  { %1212 = vmatprep.subr.bf16.mxu1 %v1475_v0 }
 0x119   :  { %1213 = vmatpush3.bf16.msra.mxu1 %v1344_v38 }
 0x11a   :  { %1214 = vmatprep.subr.bf16.mxu1 %v1475_v0 }
 0x11d   :  { %1215 = vmatpush3.bf16.msra.mxu1 %v1345_v39  ;;  %v1372_v39 = vld [vmem:[#allocation5 + $0x188] sm:$0xff]  }
 0x11e   :  { %1216 = vmatprep.subr.bf16.mxu1 %v1475_v0 }
 0x121   :  { %1217 = vmatpush3.bf16.msra.mxu1 %v1346_v40  ;;  %v1373_v40 = vld [vmem:[#allocation5 + $0x180] sm:$0xff]  }
 0x122   :  { %1218 = vmatprep.subr.bf16.mxu1 %v1475_v0 }
 0x125   :  { %1219 = vmatpush3.bf16.msra.mxu1 %v1347_v41  ;;  %v1374_v41 = vld [vmem:[#allocation5 + $0x1f8] sm:$0xff]  }
 0x126   :  { %1220 = vmatprep.subr.bf16.mxu1 %v1475_v0 }
 0x129   :  { %1221 = vmatpush3.bf16.msra.mxu1 %v1348_v51 }
 0x12a   :  { %1222 = vmatprep.subr.bf16.mxu1 %v1475_v0 }
 0x12d   :  { %1223 = vmatpush3.bf16.msra.mxu1 %v1349_v52 }
 0x12e   :  { %1248 = vmatprep.subr.bf16.mxu1 %v1475_v0 }
 0x1d0   :  { %v279_v43 = vpop.f32.mrf.mxu1 }
 0x1d1   :  { %v280_v44 = vadd.f32 %v1013_v42, %v279_v43  ;;  %v1375_v42 = vld [vmem:[#allocation5 + $0x1f0] sm:$0xff]   ;;  %v1376_v43 = vld [vmem:[#allocation5 + $0x1e8] sm:$0xff]  }
 0x1d2   :  { %v1186_v45 = vpop.f32.mrf.mxu1 }
 0x1d3   :  { %vm285_vm2 = vcmp.gt.f32.partialorder %v280_v44, 0.0  ;;  %v286_v46 = vmul.f32 0.01, %v280_v44  ;;  %v1378_v45 = vld [vmem:[#allocation5 + $0x1d8] sm:$0xff]  }
 0x1d4   :  { %v282_v47 = vpop.f32.mrf.mxu1 }
 0x1d5   :  { %v287_v48 = vsel %vm285_vm2, %v280_v44, %v286_v46  ;;  %v1377_v44 = vld [vmem:[#allocation5 + $0x1e0] sm:$0xff]   ;;  %v1379_v46 = vld [vmem:[#allocation5 + $0x1d0] sm:$0xff]  }
 0x1d6   :  { %v288_v49 = vpack.c.bf16 %v287_v48, %v287_v48  ;;  %v1187_v50 = vpop.f32.mrf.mxu1  ;;  %v1049_v47 = vld [vmem:[#allocation7 + $0x5] ss:$0 sm:$0xff] }
 0x1d8   :  { %1205 = vmatmul.mubr.bf16.vlgmr.msra.gmra.mxu0 %v288_v49 }
 0x1d9   :  { %1244 = vmatprep.mubr.msk.bf16.mxu0 %vm1476_vm0, %v1475_v0  ;;  %1229 = vmatpush3.bf16.msra.mxu0 %v1350_v53 }
 0x1da   :  { %1230 = vmatprep.subr.bf16.mxu0 %v1475_v0 }
 0x1dd   :  { %1231 = vmatpush3.bf16.msra.mxu0 %v1351_v54 }
 0x1de   :  { %1232 = vmatprep.subr.bf16.mxu0 %v1475_v0 }
 0x1e1   :  { %1233 = vmatpush3.bf16.msra.mxu0 %v1352_v55 }
 0x1e2   :  { %1234 = vmatprep.subr.bf16.mxu0 %v1475_v0 }
 0x1e5   :  { %1235 = vmatpush3.bf16.msra.mxu0 %v1353_v56  ;;  %v1380_v56 = vld [vmem:[#allocation5 + $0x1c8] sm:$0xff]  }
 0x1e6   :  { %1236 = vmatprep.subr.bf16.mxu0 %v1475_v0 }
 0x1e9   :  { %1237 = vmatpush3.bf16.msra.mxu0 %v1354_v57  ;;  %v1381_v57 = vld [vmem:[#allocation5 + $0x1c0] sm:$0xff]  }
 0x1ea   :  { %1238 = vmatprep.subr.bf16.mxu0 %v1475_v0 }
 0x1ed   :  { %1239 = vmatpush3.bf16.msra.mxu0 %v1355_v58  ;;  %v1058_v58 = vld [vmem:[#allocation7 + $0x6] ss:$0 sm:$0xff] }
 0x1ee   :  { %1240 = vmatprep.subr.bf16.mxu0 %v1475_v0 }
 0x1f1   :  { %1241 = vmatpush3.bf16.msra.mxu0 %v1356_v5 }
 0x1f2   :  { %1242 = vmatprep.subr.bf16.mxu0 %v1475_v0 }
 0x1f5   :  { %1243 = vmatpush3.bf16.msra.mxu0 %v1357_v6 }
 0x1f6   :  { %1268 = vmatprep.subr.bf16.mxu0 %v1475_v0 }
 0x298   :  { %v396_v60 = vpop.f32.mrf.mxu0 }
 0x299   :  { %v397_v61 = vadd.f32 %v1022_v59, %v396_v60 }
 0x29a   :  { %v1206_v62 = vpop.f32.mrf.mxu0 }
 0x29b   :  { %vm402_vm3 = vcmp.gt.f32.partialorder %v397_v61, 0.0  ;;  %v403_v63 = vmul.f32 0.01, %v397_v61 }
 0x29c   :  { %v399_v1 = vpop.f32.mrf.mxu0 }
 0x29d   :  { %v404_v2 = vsel %vm402_vm3, %v397_v61, %v403_v63 }
 0x29e   :  { %v405_v3 = vpack.c.bf16 %v404_v2, %v404_v2  ;;  %v1207_v4 = vpop.f32.mrf.mxu0 }
 0x29f   :  { %v1067_v4 = vld [vmem:[#allocation7 + $0x7] ss:$0 sm:$0xff] }
 0x2a0   :  { %1225 = vmatmul.mubr.bf16.vlgmr.msra.gmra.mxu1 %v405_v3 }
 0x2a1   :  { %1264 = vmatprep.mubr.msk.bf16.mxu1 %vm1476_vm0, %v1475_v0  ;;  %1249 = vmatpush3.bf16.msra.mxu1 %v1358_v7 }
 0x2a2   :  { %1250 = vmatprep.subr.bf16.mxu1 %v1475_v0 }
 0x2a5   :  { %1251 = vmatpush3.bf16.msra.mxu1 %v1359_v8 }
 0x2a6   :  { %1252 = vmatprep.subr.bf16.mxu1 %v1475_v0 }
 0x2a9   :  { %1253 = vmatpush3.bf16.msra.mxu1 %v1360_v9 }
 0x2aa   :  { %1254 = vmatprep.subr.bf16.mxu1 %v1475_v0 }
 0x2ad   :  { %1255 = vmatpush3.bf16.msra.mxu1 %v1361_v10 }
 0x2ae   :  { %1256 = vmatprep.subr.bf16.mxu1 %v1475_v0 }
 0x2b1   :  { %1257 = vmatpush3.bf16.msra.mxu1 %v1362_v11 }
 0x2b2   :  { %1258 = vmatprep.subr.bf16.mxu1 %v1475_v0 }
 0x2b5   :  { %1259 = vmatpush3.bf16.msra.mxu1 %v1363_v12 }
 0x2b6   :  { %1260 = vmatprep.subr.bf16.mxu1 %v1475_v0 }
 0x2b9   :  { %1261 = vmatpush3.bf16.msra.mxu1 %v1364_v22 }
 0x2ba   :  { %1262 = vmatprep.subr.bf16.mxu1 %v1475_v0 }
 0x2bd   :  { %1263 = vmatpush3.bf16.msra.mxu1 %v1365_v23 }
 0x2be   :  { %1288 = vmatprep.subr.bf16.mxu1 %v1475_v0 }
 0x360   :  { %v513_v14 = vpop.f32.mrf.mxu1 }
 0x361   :  { %v514_v15 = vadd.f32 %v1031_v13, %v513_v14 }
 0x362   :  { %v1226_v16 = vpop.f32.mrf.mxu1 }
 0x363   :  { %vm519_vm4 = vcmp.gt.f32.partialorder %v514_v15, 0.0  ;;  %v520_v17 = vmul.f32 0.01, %v514_v15 }
 0x364   :  { %v516_v18 = vpop.f32.mrf.mxu1 }
 0x365   :  { %v521_v19 = vsel %vm519_vm4, %v514_v15, %v520_v17 }
 0x366   :  { %v522_v20 = vpack.c.bf16 %v521_v19, %v521_v19  ;;  %v1227_v21 = vpop.f32.mrf.mxu1 }
 0x368   :  { %1245 = vmatmul.mubr.bf16.vlgmr.msra.gmra.mxu0 %v522_v20 }
 0x369   :  { %1284 = vmatprep.mubr.msk.bf16.mxu0 %vm1476_vm0, %v1475_v0  ;;  %1269 = vmatpush3.bf16.msra.mxu0 %v1366_v24 }
 0x36a   :  { %1270 = vmatprep.subr.bf16.mxu0 %v1475_v0 }
 0x36d   :  { %1271 = vmatpush3.bf16.msra.mxu0 %v1367_v25 }
 0x36e   :  { %1272 = vmatprep.subr.bf16.mxu0 %v1475_v0 }
 0x371   :  { %1273 = vmatpush3.bf16.msra.mxu0 %v1368_v26 }
 0x372   :  { %1274 = vmatprep.subr.bf16.mxu0 %v1475_v0 }
 0x375   :  { %1275 = vmatpush3.bf16.msra.mxu0 %v1369_v27 }
 0x376   :  { %1276 = vmatprep.subr.bf16.mxu0 %v1475_v0 }
 0x379   :  { %1277 = vmatpush3.bf16.msra.mxu0 %v1370_v28 }
 0x37a   :  { %1278 = vmatprep.subr.bf16.mxu0 %v1475_v0 }
 0x37d   :  { %1279 = vmatpush3.bf16.msra.mxu0 %v1371_v29 }
 0x37e   :  { %1280 = vmatprep.subr.bf16.mxu0 %v1475_v0 }
 0x381   :  { %1281 = vmatpush3.bf16.msra.mxu0 %v1372_v39 }
 0x382   :  { %1282 = vmatprep.subr.bf16.mxu0 %v1475_v0 }
 0x385   :  { %1283 = vmatpush3.bf16.msra.mxu0 %v1373_v40 }
 0x428   :  { %v630_v31 = vpop.f32.mrf.mxu0 }
 0x429   :  { %v631_v32 = vadd.f32 %v1040_v30, %v630_v31 }
 0x42a   :  { %v1246_v33 = vpop.f32.mrf.mxu0 }
 0x42b   :  { %vm636_vm5 = vcmp.gt.f32.partialorder %v631_v32, 0.0  ;;  %v637_v34 = vmul.f32 0.01, %v631_v32 }
 0x42c   :  { %v633_v35 = vpop.f32.mrf.mxu0 }
 0x42d   :  { %v638_v36 = vsel %vm636_vm5, %v631_v32, %v637_v34 }
 0x42e   :  { %v639_v37 = vpack.c.bf16 %v638_v36, %v638_v36  ;;  %v1247_v38 = vpop.f32.mrf.mxu0 }
 0x430   :  { %1265 = vmatmul.mubr.bf16.vlgmr.msra.gmra.mxu1 %v639_v37 }
 0x431   :  { %1304 = vmatprep.mubr.msk.bf16.mxu1 %vm1476_vm0, %v1475_v0  ;;  %1289 = vmatpush3.bf16.msra.mxu1 %v1374_v41 }
 0x432   :  { %1290 = vmatprep.subr.bf16.mxu1 %v1475_v0 }
 0x435   :  { %1291 = vmatpush3.bf16.msra.mxu1 %v1375_v42 }
 0x436   :  { %1292 = vmatprep.subr.bf16.mxu1 %v1475_v0 }
 0x439   :  { %1293 = vmatpush3.bf16.msra.mxu1 %v1376_v43 }
 0x43a   :  { %1294 = vmatprep.subr.bf16.mxu1 %v1475_v0 }
 0x43d   :  { %1295 = vmatpush3.bf16.msra.mxu1 %v1377_v44 }
 0x43e   :  { %1296 = vmatprep.subr.bf16.mxu1 %v1475_v0 }
 0x441   :  { %1297 = vmatpush3.bf16.msra.mxu1 %v1378_v45 }
 0x442   :  { %1298 = vmatprep.subr.bf16.mxu1 %v1475_v0 }
 0x445   :  { %1299 = vmatpush3.bf16.msra.mxu1 %v1379_v46 }
 0x446   :  { %1300 = vmatprep.subr.bf16.mxu1 %v1475_v0 }
 0x449   :  { %1301 = vmatpush3.bf16.msra.mxu1 %v1380_v56 }
 0x44a   :  { %1302 = vmatprep.subr.bf16.mxu1 %v1475_v0 }
 0x44d   :  { %1303 = vmatpush3.bf16.msra.mxu1 %v1381_v57 }
 0x4f0   :  { %v747_v48 = vpop.f32.mrf.mxu1 }
 0x4f1   :  { %v748_v49 = vadd.f32 %v1049_v47, %v747_v48 }
 0x4f2   :  { %v1266_v50 = vpop.f32.mrf.mxu1 }
 0x4f3   :  { %vm753_vm6 = vcmp.gt.f32.partialorder %v748_v49, 0.0  ;;  %v754_v51 = vmul.f32 0.01, %v748_v49 }
 0x4f4   :  { %v750_v52 = vpop.f32.mrf.mxu1 }
 0x4f5   :  { %v755_v53 = vsel %vm753_vm6, %v748_v49, %v754_v51 }
 0x4f6   :  { %v756_v54 = vpack.c.bf16 %v755_v53, %v755_v53  ;;  %v1267_v55 = vpop.f32.mrf.mxu1 }
 0x4f8   :  { %1285 = vmatmul.mubr.bf16.vlgmr.msra.gmra.mxu0 %v756_v54 }
 0x5b8   :  { %v864_v59 = vpop.f32.mrf.mxu0 }
 0x5b9   :  { %v865_v60 = vadd.f32 %v1058_v58, %v864_v59 }
 0x5ba   :  { %v1286_v61 = vpop.f32.mrf.mxu0 }
 0x5bb   :  { %vm870_vm7 = vcmp.gt.f32.partialorder %v865_v60, 0.0  ;;  %v871_v62 = vmul.f32 0.01, %v865_v60 }
 0x5bc   :  { %v867_v63 = vpop.f32.mrf.mxu0 }
 0x5bd   :  { %v872_v1 = vsel %vm870_vm7, %v865_v60, %v871_v62 }
 0x5be   :  { %v873_v2 = vpack.c.bf16 %v872_v1, %v872_v1  ;;  %v1287_v3 = vpop.f32.mrf.mxu0 }
 0x5c0   :  { %1305 = vmatmul.mubr.bf16.vlgmr.msra.gmra.mxu1 %v873_v2 }
 0x680   :  { %v981_v5 = vpop.f32.mrf.mxu1 }
 0x681   :  { %v982_v6 = vadd.f32 %v1067_v4, %v981_v5 }
 0x682   :  { %v1306_v0 = vpop.f32.mrf.mxu1 }
 0x683   :  { %987 = vst [vmem:[#allocation8] sm:$0xff] %v982_v6 }
 0x684   :  { %v984_v7 = vpop.f32.mrf.mxu1 }
 0x685   :  { %1453 = shalt.err (!%p1450_p5)
}
 0x686   :  { %997 = dma.vmem_to_hbm [thread:$0]  %s995_s2, 128, %s1593_s3, [#allocation4]   ;;  %v1307_v8 = vpop.f32.mrf.mxu1 }
 0x687   :  { %1466 = dma.done.wait [#allocation4], 128  }
 0x688   :  { %1467 = vsyncadd [#allocation4], 4294967168 }
 0x689   :  { %1001 = vsyncpa [#allocation3], 1 }
 0x68a   :  { %1002 = vsyncpa [#allocation6], 1 }
 0x68b   :  { %1003 = vsyncpa [#allocation4], 1 }

</bundles_post_ra>
